<compile_context>
chip_gen: v6e
topology: v6e:2x2x1
jax: 0.10.0
libtpu: 0.0.40
codegen_flags: <defaults>
</compile_context>

<pallas_src>
import math

import jax
import jax.numpy as jnp
from jax.experimental import pallas as pl
from jax.experimental.pallas import tpu as pltpu


def dot_product_attention_kernel(q_ref, k_ref, v_ref, valid_ref, out_ref):
    q = q_ref[...]                                     # (Bt, Q, D)
    k = k_ref[...]                                     # (Bt, K, D)
    v = v_ref[...]                                     # (Bt, K, Dv)

    d = q.shape[-1]
    scale = jnp.float32(1.0 / math.sqrt(d))

    # Batched QK^T on the MXU (batch dim folded into one dot_general).
    scores = jnp.einsum('bqd,bkd->bqk', q, k,
                        preferred_element_type=jnp.float32)        # (Bt, Q, K)
    scores = scores * scale

    Bt, Qn, Kn = scores.shape

    # Masked softmax along K: one valid length per batch element.
    k_idx = jax.lax.broadcasted_iota(jnp.int32, (Bt, Qn, Kn), 2)
    valid = valid_ref[...]                                         # (Bt, 1) int32
    scores = jnp.where(k_idx < valid[:, :, None], scores, jnp.float32(-1e6))

    m = jnp.max(scores, axis=-1, keepdims=True)
    e = jnp.exp(scores - m)
    s = jnp.sum(e, axis=-1, keepdims=True)
    # approx=True would issue on the EUP slot (essentially free) at the cost of
    # ~1e-3 relative error in the weights; keep the exact reciprocal for parity
    # with the reference softmax.
    attn = e * pl.reciprocal(s, approx=False)                      # (Bt, Q, K)

    # Weighted sum of values on the MXU.
    out = jnp.einsum('bqk,bkd->bqd', attn.astype(v.dtype), v,
                     preferred_element_type=jnp.float32)           # (Bt, Q, Dv)

    # TODO(synk): for production shapes (large K / Dv < 128) tile K with an
    # online-softmax accumulator and present a lane-dense output slab; at these
    # toy shapes the whole problem fits one VMEM tile.
    out_ref[...] = out.astype(out_ref.dtype)


def dot_product_attention(queries, keys, values, valid_lens=None):
    """queries (B,Q,D), keys (B,K,D), values (B,K,Dv), valid_lens (B,) or None.
    Returns (B, Q, Dv) float32. Dropout is identity (inference)."""
    B, Q, D = queries.shape
    _, K, _ = keys.shape
    _, _, Dv = values.shape

    if valid_lens is None:
        valid_lens = jnp.full((B,), K, dtype=jnp.int32)
    valid2d = valid_lens.astype(jnp.int32).reshape(B, 1)
    # TODO(synk): 2-D (per-query) valid_lens from the reference masked_softmax is
    # not supported here; only the 1-D (per-batch) / None cases are implemented.

    # Batch tile: a single grid step for small B (amortizes per-step overhead);
    # 8 per step for larger batches (keeps the (Bt, 1) valid-lens block
    # sublane-aligned and lets the batch grid split across TensorCores).
    Bt = 8 if (B > 8 and B % 8 == 0) else B
    grid = (B // Bt,)

    grid_spec = pltpu.PrefetchScalarGridSpec(
        num_scalar_prefetch=0,
        grid=grid,
        in_specs=[
            pl.BlockSpec((Bt, Q, D), lambda i: (i, 0, 0)),
            pl.BlockSpec((Bt, K, D), lambda i: (i, 0, 0)),
            pl.BlockSpec((Bt, K, Dv), lambda i: (i, 0, 0)),
            pl.BlockSpec((Bt, 1), lambda i: (i, 0)),
        ],
        out_specs=pl.BlockSpec((Bt, Q, Dv), lambda i: (i, 0, 0)),
    )

    return pl.pallas_call(
        dot_product_attention_kernel,
        out_shape=jax.ShapeDtypeStruct((B, Q, Dv), jnp.float32),
        grid_spec=grid_spec,
        compiler_params=pltpu.CompilerParams(
            dimension_semantics=("parallel",)),
    )(queries, keys, values, valid2d)


def dot_product_attention_ref(queries, keys, values, valid_lens=None):
    d = queries.shape[-1]
    scores = jnp.einsum('bqd,bkd->bqk', queries, keys) / math.sqrt(d)
    if valid_lens is not None:
        K = keys.shape[1]
        mask = jnp.arange(K)[None, None, :] < valid_lens[:, None, None]
        scores = jnp.where(mask, scores, -1e6)
    attn = jax.nn.softmax(scores, axis=-1)
    return jnp.einsum('bqk,bkd->bqd', attn, values)


if __name__ == "__main__":
    # Small shapes consistent with the module's forward (queries/keys share d).
    B, Q, K = 2, 4, 10
    D, Dv = 20, 16

    key = jax.random.PRNGKey(0)
    k0, k1, k2 = jax.random.split(key, 3)

    queries = jax.random.normal(k0, (B, Q, D), dtype=jnp.float32)
    keys = jax.random.normal(k1, (B, K, D), dtype=jnp.float32)
    values = jax.random.normal(k2, (B, K, Dv), dtype=jnp.float32)
    valid_lens = jnp.array([2, 6], dtype=jnp.int32)

    out = dot_product_attention(queries, keys, values, valid_lens)
    out = jax.block_until_ready(out)

    ref = dot_product_attention_ref(queries, keys, values, valid_lens)
    assert out.shape == (B, Q, Dv)
    assert jnp.allclose(out, ref, atol=1e-5, rtol=1e-5), "mismatch vs reference"

    # Also exercise the valid_lens=None path (plain softmax).
    out_nomask = jax.block_until_ready(dot_product_attention(queries, keys, values, None))
    ref_nomask = dot_product_attention_ref(queries, keys, values, None)
    assert jnp.allclose(out_nomask, ref_nomask, atol=1e-5, rtol=1e-5), "mismatch (no mask)"

    # TODO(synk): training-mode dropout on attention weights would use
    # pltpu.prng_seed + pltpu.prng_random_bits inside the kernel; it is the
    # identity at inference and therefore omitted.
    print("KERNEL_OK")
</pallas_src>

<mosaic_0001>
module attributes {stable_mosaic.version = 11 : i64} {
  func.func @dot_product_attention_kernel(%arg0: i32, %arg1: memref<2x4x20xf32, #tpu.memory_space<vmem>>, %arg2: memref<2x10x20xf32, #tpu.memory_space<vmem>>, %arg3: memref<2x10x16xf32, #tpu.memory_space<vmem>>, %arg4: memref<2x1xi32, #tpu.memory_space<vmem>>, %arg5: memref<2x4x16xf32, #tpu.memory_space<vmem>>) attributes {dimension_semantics = [#tpu.dimension_semantics<parallel>], iteration_bounds = array<i64: 1>, scalar_prefetch = 0 : i64, scratch_operands = 0 : i64, tpu.core_type = #tpu.core_type<tc>, window_params = [{transform_indices = @transform_0, window_bounds = array<i64: 2, 4, 20>}, {transform_indices = @transform_1, window_bounds = array<i64: 2, 10, 20>}, {transform_indices = @transform_2, window_bounds = array<i64: 2, 10, 16>}, {transform_indices = @transform_3, window_bounds = array<i64: 2, 1>}, {transform_indices = @transform_4, window_bounds = array<i64: 2, 4, 16>}]} {
    %c0 = arith.constant 0 : index
    %c0_0 = arith.constant 0 : index
    %c0_1 = arith.constant 0 : index
    %0 = vector.load %arg1[%c0, %c0_0, %c0_1] : memref<2x4x20xf32, #tpu.memory_space<vmem>>, vector<2x4x20xf32>
    %c0_2 = arith.constant 0 : index
    %c0_3 = arith.constant 0 : index
    %c0_4 = arith.constant 0 : index
    %1 = vector.load %arg2[%c0_2, %c0_3, %c0_4] : memref<2x10x20xf32, #tpu.memory_space<vmem>>, vector<2x10x20xf32>
    %c0_5 = arith.constant 0 : index
    %c0_6 = arith.constant 0 : index
    %c0_7 = arith.constant 0 : index
    %2 = vector.load %arg3[%c0_5, %c0_6, %c0_7] : memref<2x10x16xf32, #tpu.memory_space<vmem>>, vector<2x10x16xf32>
    "tpu.trace_start"() <{level = 10 : i32, message = "bqd,bkd->bqk"}> : () -> ()
    %cst = arith.constant dense<0.000000e+00> : vector<2x4x10xf32>
    %3 = tpu.matmul %0, %1, %cst {dimension_numbers = #tpu.dot_dimension_numbers<[2], [2], [1], [1], [0, 0, 0, 1, 1, 1], [0], [0]>} : vector<2x4x20xf32>, vector<2x10x20xf32>, vector<2x4x10xf32> -> vector<2x4x10xf32>
    "tpu.trace_stop"() : () -> ()
    %cst_8 = arith.constant 0.223606795 : f32
    %4 = vector.broadcast %cst_8 : f32 to vector<2x4x10xf32>
    %5 = arith.mulf %3, %4 : vector<2x4x10xf32>
    %6 = tpu.iota {dimensions = array<i32: 2>} : vector<2x4x10xi32>
    %c0_9 = arith.constant 0 : index
    %c0_10 = arith.constant 0 : index
    %7 = vector.load %arg4[%c0_9, %c0_10] : memref<2x1xi32, #tpu.memory_space<vmem>>, vector<2x1xi32>
    %8 = vector.shape_cast %7 : vector<2x1xi32> to vector<2x1x1xi32>
    %9 = vector.broadcast %8 : vector<2x1x1xi32> to vector<2x4x10xi32>
    %10 = arith.cmpi slt, %6, %9 : vector<2x4x10xi32>
    %cst_11 = arith.constant -1.000000e+06 : f32
    %11 = vector.broadcast %cst_11 : f32 to vector<2x4x10xf32>
    %12 = arith.select %10, %5, %11 : vector<2x4x10xi1>, vector<2x4x10xf32>
    %cst_12 = arith.constant dense<0xFF800000> : vector<2x4xf32>
    %13 = vector.multi_reduction <maximumf>, %12, %cst_12 [2] : vector<2x4x10xf32> to vector<2x4xf32>
    %14 = vector.shape_cast %13 : vector<2x4xf32> to vector<2x4x1xf32>
    %15 = vector.broadcast %14 : vector<2x4x1xf32> to vector<2x4x10xf32>
    %16 = arith.subf %12, %15 : vector<2x4x10xf32>
    %17 = math.exp %16 : vector<2x4x10xf32>
    %cst_13 = arith.constant dense<0.000000e+00> : vector<2x4xf32>
    %18 = vector.multi_reduction <add>, %17, %cst_13 [2] : vector<2x4x10xf32> to vector<2x4xf32>
    %19 = vector.shape_cast %18 : vector<2x4xf32> to vector<2x4x1xf32>
    %20 = tpu.reciprocal %19 : vector<2x4x1xf32> -> vector<2x4x1xf32>
    %21 = vector.broadcast %20 : vector<2x4x1xf32> to vector<2x4x10xf32>
    %22 = arith.mulf %17, %21 : vector<2x4x10xf32>
    "tpu.trace_start"() <{level = 10 : i32, message = "bqk,bkd->bqd"}> : () -> ()
    %cst_14 = arith.constant dense<0.000000e+00> : vector<2x4x16xf32>
    %23 = tpu.matmul %22, %2, %cst_14 {dimension_numbers = #tpu.dot_dimension_numbers<[2], [1], [1], [2], [0, 0, 0, 1, 1, 2], [0], [0]>} : vector<2x4x10xf32>, vector<2x10x16xf32>, vector<2x4x16xf32> -> vector<2x4x16xf32>
    "tpu.trace_stop"() : () -> ()
    %c0_15 = arith.constant 0 : index
    %c0_16 = arith.constant 0 : index
    %c0_17 = arith.constant 0 : index
    %24 = vector.load %arg5[%c0_15, %c0_16, %c0_17] : memref<2x4x16xf32, #tpu.memory_space<vmem>>, vector<2x4x16xf32>
    tpu.vector_store %arg5[%c0_15, %c0_16, %c0_17], %23 {strides = array<i32>} : memref<2x4x16xf32, #tpu.memory_space<vmem>>, vector<2x4x16xf32>,
    return
  }
  func.func @transform_0(%arg0: i32) -> (i32, i32, i32) {
    %c0_i32 = arith.constant 0 : i32
    %c0_i32_0 = arith.constant 0 : i32
    %c0_i32_1 = arith.constant 0 : i32
    return %arg0, %c0_i32, %c0_i32_0 : i32, i32, i32
  }
  func.func @transform_1(%arg0: i32) -> (i32, i32, i32) {
    %c0_i32 = arith.constant 0 : i32
    %c0_i32_0 = arith.constant 0 : i32
    %c0_i32_1 = arith.constant 0 : i32
    return %arg0, %c0_i32, %c0_i32_0 : i32, i32, i32
  }
  func.func @transform_2(%arg0: i32) -> (i32, i32, i32) {
    %c0_i32 = arith.constant 0 : i32
    %c0_i32_0 = arith.constant 0 : i32
    %c0_i32_1 = arith.constant 0 : i32
    return %arg0, %c0_i32, %c0_i32_0 : i32, i32, i32
  }
  func.func @transform_3(%arg0: i32) -> (i32, i32) {
    %c0_i32 = arith.constant 0 : i32
    %c0_i32_0 = arith.constant 0 : i32
    return %arg0, %c0_i32 : i32, i32
  }
  func.func @transform_4(%arg0: i32) -> (i32, i32, i32) {
    %c0_i32 = arith.constant 0 : i32
    %c0_i32_0 = arith.constant 0 : i32
    %c0_i32_1 = arith.constant 0 : i32
    return %arg0, %c0_i32, %c0_i32_0 : i32, i32, i32
  }
}

</mosaic_0001>

<bundles_post_ra>
// kernel: tpu_custom_call.1
= control target key start
LH: loop header
LB: loop body
LE: loop exit
PB: predicated region body
PF: predicated region fallthrough
CT: control target
= control target key end

     0   :  { %vm28_vm0 = vcmask 162816   ;;  %v189_v2 = vlaneseq  ;;  %v517_v3 = vmov 0.0   ;;  %s611_s0 = inlined_call_operand.vmem [shape: f32[2,4,20], index: 0, kind: input, shape index: {}]   ;;  %s612_s1 = inlined_call_operand.vmem [shape: f32[2,10,20], index: 1, kind: input, shape index: {}]   ;;  %s613_s2 = inlined_call_operand.vmem [shape: f32[2,10,16], index: 2, kind: input, shape index: {}]   ;;  %s614_s3 = inlined_call_operand.vmem [shape: s32[2,1], index: 3, kind: input, shape index: {}]   ;;  %s615_s4 = inlined_call_operand.hbm [shape: f32[2,4,16], index: 4, kind: output, shape index: {}]  }
   0x1   :  { %v21_v0 = vld [vmem:[%s612_s1 + $0x8] sm:$0x3]  ;;  %v23_v1 = vld [vmem:[%s612_s1 + $0x18] sm:$0x3]  ;;  %451 = vmatprep.subr.mxu0 %v517_v3  ;;  %458 = vmatprep.subr.mxu1 %v517_v3  ;;  %v20_v4 = vld [vmem:[%s612_s1] sm:$0xff] }
   0x2   :  { %452 = vmatpush3.xpose.msk.msra.mxu0 %vm28_vm0, %v21_v0  ;;  %459 = vmatpush3.xpose.msk.msra.mxu1 %vm28_vm0, %v23_v1  ;;  %v22_v5 = vld [vmem:[%s612_s1 + $0x10] sm:$0xff] }
   0x3   :  { %453 = vmatprep.subr.mxu0 %v517_v3  ;;  %460 = vmatprep.subr.mxu1 %v517_v3 }
   0x4   :  { %9 = vsyncpa [#allocation3], 0  ;;  %vm518_vm1 = vmmov 0   ;;  %v519_v6 = vmov 1966171168   ;;  %v204_v8 = vshrl.u32 %v189_v2, 7 }
   0x5   :  { %455 = vmatprep.mubr.msk.f32.mxu0 %vm518_vm1, %v517_v3  ;;  %462 = vmatprep.mubr.msk.f32.mxu1 %vm518_vm1, %v517_v3  ;;  %v201_v7 = vunpack.c.l.s4 %v519_v6  ;;  %v520_v9 = vmov 0   ;;  %v434_v10 = vld.sshfl [vmem:[%s614_s3] sm:$0x11 pattern:$0x75316420]  ;;  %v190_v22 = vand.u32 127, %v189_v2 }
   0x6   :  { %486 = vset.pattern.permute.xlu0 %v520_v9  ;;  %454 = vmatpush3.xpose.msk.msra.mxu0 %vm28_vm0, %v20_v4  ;;  %v18_v11 = vld [vmem:[%s611_s0] sm:$0xf]  ;;  %v19_v12 = vld [vmem:[%s611_s0 + $0x4] sm:$0xf]  ;;  %v199_v13 = vcombine.high %v434_v10, %v434_v10  ;;  %v216_v16 = vsub.s32 0, %v204_v8  ;;  %vm232_vm3 = vcmask 76800  }
   0x7   :  { %461 = vmatpush3.xpose.msk.msra.mxu1 %vm28_vm0, %v22_v5  ;;  %v202_v14 = vunpack.c.0.s8 %v201_v7  ;;  %465 = vmatprep.subr.mxu0 %v517_v3  ;;  %v25_v44 = vld [vmem:[%s613_s2 + $0x8] sm:$0x3]  ;;  %vm259_vm5 = vcmask 1041408   ;;  %v24_v45 = vld [vmem:[%s613_s2] sm:$0xff]  ;;  %v27_v46 = vld [vmem:[%s613_s2 + $0x18] sm:$0x3] }
   0x8   :  { %472 = vmatprep.subr.mxu1 %v517_v3  ;;  %v26_v47 = vld [vmem:[%s613_s2 + $0x10] sm:$0xff]  ;;  %vm255_vm6 = vcmask 80896   ;;  %vm409_vm7 = vcmask 125952   ;;  %s521_s8 = smov [#allocation2]  }
   0x9   :  { %v205_v15 = vsub.s32 %v202_v14, %v204_v8  ;;  %456 = vmatmul.mubr.msk.f32.vlgmr.msra.gmra.mxu0 %vm28_vm0, %v18_v11  ;;  %s417_s9 = sshll.u32 %s521_s8, 4  ;;  %s418_s9 = int_to_ptr.vmem [resolvable:$true] %s417_s9 }
   0xa   :  { %463 = vmatmul.mubr.msk.f32.vlgmr.msra.gmra.mxu1 %vm28_vm0, %v19_v12  ;;  %469 = vmatprep.mubr.msk.f32.mxu0 %vm518_vm1, %v517_v3  ;;  %s495_s2 = scalar_lea.vmem %s418_s9, 128  ;;  %p500_p1 = scmp.lt.s32.totalorder %s418_s9, %s418_s9 }
   0xb   :  { %v206_v17 = vrot.slane %v434_v10, %v205_v15  ;;  %v213_v18 = vrot.slane %v199_v13, %v205_v15  ;;  %476 = vmatprep.mubr.msk.f32.mxu1 %vm518_vm1, %v517_v3  ;;  %466 = vmatpush3.msk.msra.mxu0 %vm259_vm5, %v25_v44  ;;  %p496_p0 = scmp.ne.s32.totalorder %s418_s9, %s495_s2  ;;  %p501_p2 = scmp.lt.s32.totalorder %s495_s2, %s495_s2 }
   0xc   :  { %467 = vmatprep.subr.mxu0 %v517_v3  ;;  %473 = vmatpush3.msk.msra.mxu1 %vm259_vm5, %v27_v46 }
   0xd   :  { %v217_v19 = vrot.slane %v206_v17, %v216_v16  ;;  %v221_v20 = vrot.slane %v213_v18, %v216_v16  ;;  %468 = vmatpush3.msra.mxu0 %v24_v45  ;;  %474 = vmatprep.subr.mxu1 %v517_v3  ;;  %p502_p3 = por %p501_p2, %p500_p1 }
   0xe   :  { %475 = vmatpush3.msra.mxu1 %v26_v47 }
   0xf   :  { %223 = vperm.xlu0 %486, %v217_v19   ;;  %p503_p4 = pnand %p502_p3, %p496_p0 }
  0x13   :  { %226 = vperm.xlu0 %486, %v221_v20  }
  0x8a   :  { %v224_v21 = vpop.permute.xlu0 %223 }
  0x8b   :  { %vm228_vm2 = vcmp.lt.s32.totalorder %v190_v22, %v224_v21 }
  0x8e   :  { %v227_v23 = vpop.permute.xlu0 %226 }
  0x8f   :  { %vm229_vm4 = vcmp.lt.s32.totalorder %v190_v22, %v227_v23 }
  0xc9   :  { %v104_v24 = vpop.f32.mrf.mxu0 }
  0xca   :  { %v183_v25 = vpop.f32.mrf.mxu1  ;;  %v187_v26 = vmul.f32 0.2236068, %v104_v24 }
  0xcb   :  { %v188_v27 = vmul.f32 0.2236068, %v183_v25  ;;  %v457_v28 = vpop.f32.mrf.mxu0 }
  0xcc   :  { %v464_v29 = vpop.f32.mrf.mxu1  ;;  %v230_v30 = vsel %vm228_vm2, %v187_v26, -1000000.0 }
  0xcd   :  { %v233_v31 = vsel %vm232_vm3, %v230_v30, -inf  ;;  %v231_v32 = vsel %vm229_vm4, %v188_v27, -1000000.0 }
  0xce   :  { %234 = vmax.xlane.f32.xlu1 %v233_v31  ;;  %v236_v33 = vsel %vm232_vm3, %v231_v32, -inf }
  0xd2   :  { %237 = vmax.xlane.f32.xlu1 %v236_v33 }
 0x157   :  { %v235_v34 = vpop.xlane.xlu1 %234 }
 0x158   :  { %v239_v35 = vsub.f32 %v230_v30, %v235_v34 }
 0x15a   :  { %v241_v36 = vmul.f32 1.442695, %v239_v35 }
 0x15b   :  { %v238_v37 = vpop.xlane.xlu1 %237 }
 0x15c   :  { %487 = vpow2.f32 %v241_v36  ;;  %v240_v38 = vsub.f32 %v231_v32, %v238_v37 }
 0x15e   :  { %v243_v39 = vmul.f32 1.442695, %v240_v38 }
 0x160   :  { %489 = vpow2.f32 %v243_v39 }
 0x169   :  { %v488_v40 = vpop.eup %487 }
 0x16a   :  { %v245_v41 = vsel %vm232_vm3, %v488_v40, 0.0 }
 0x16b   :  { %246 = vadd.xlane.f32.xlu0 %v245_v41 }
 0x16d   :  { %v490_v42 = vpop.eup %489 }
 0x16e   :  { %v248_v43 = vsel %vm232_vm3, %v490_v42, 0.0 }
 0x16f   :  { %249 = vadd.xlane.f32.xlu1 %v248_v43 }
 0x1f4   :  { %v247_v48 = vpop.xlane.xlu0 %246 }
 0x1f5   :  { %491 = vrcp.f32 %v247_v48 }
 0x1f8   :  { %v250_v49 = vpop.xlane.xlu1 %249 }
 0x1f9   :  { %493 = vrcp.f32 %v250_v49 }
 0x202   :  { %v492_v50 = vpop.eup %491 }
 0x203   :  { %v253_v51 = vmul.f32 %v492_v50, %v488_v40 }
 0x205   :  { %470 = vmatmul.mubr.msk.f32.vlgmr.msra.gmra.mxu0 %vm255_vm6, %v253_v51 }
 0x206   :  { %v494_v52 = vpop.eup %493 }
 0x207   :  { %v254_v53 = vmul.f32 %v494_v52, %v490_v42 }
 0x209   :  { %477 = vmatmul.mubr.msk.f32.vlgmr.msra.gmra.mxu1 %vm255_vm6, %v254_v53 }
 0x2c5   :  { %v329_v54 = vpop.f32.mrf.mxu0 }
 0x2c6   :  { %410 = vst.msk [vmem:[#allocation2] sm:$0xf] %vm409_vm7, %v329_v54 }
 0x2c7   :  { %v471_v55 = vpop.f32.mrf.mxu0 }
 0x2c9   :  { %v405_v56 = vpop.f32.mrf.mxu1 }
 0x2ca   :  { %411 = vst.msk [vmem:[#allocation2 + $0x4] sm:$0xf] %vm409_vm7, %v405_v56 }
 0x2cb   :  { %v478_v57 = vpop.f32.mrf.mxu1 }
 0x2cc   :  { %506 = shalt.err (!%p503_p4)
}
 0x2cd   :  { %s522_s10 = smov 64   ;;  %s523_s11 = smov 4  }
 0x2ce   :  { %423 = dma.vmem_to_hbm [thread:$0]  %s418_s9, 128, %s615_s4, [#allocation3], %s522_s10, %s522_s10, %s523_s11  }
 0x2cf   :  { %515 = dma.done.wait [#allocation3], 128  }
 0x2d0   :  { %516 = vsyncadd [#allocation3], 4294967168 }
 0x2d1   :  { %427 = vsyncpa [#allocation3], 1 }

</bundles_post_ra>
